<compile_context>
chip_gen: v7x
topology: tpu7x:2x2x1
jax: 0.10.0
libtpu: 0.0.40
codegen_flags: <defaults>
</compile_context>

<pallas_src>
import jax
import jax.numpy as jnp
from jax.experimental import pallas as pl
from jax.experimental.pallas import tpu as pltpu

EPS = 1e-5  # PyTorch nn.LayerNorm default


def add_and_norm_kernel(x_ref, r_ref, g_ref, b_ref, o_ref):
    # x_ref, r_ref, o_ref: (1, C, T) tiles; g_ref, b_ref: (C, 1).
    # Normalization is per spatial column (reduce over the C / sublane axis).
    s = x_ref[0].astype(jnp.float32) + r_ref[0].astype(jnp.float32)   # (C, T) f32
    inv_c = 1.0 / s.shape[0]
    # Single-pass stats: one read of s, sums on the (1, T) row only.
    mean = jnp.sum(s, axis=0, keepdims=True) * inv_c                  # (1, T)
    ex2 = jnp.sum(s * s, axis=0, keepdims=True) * inv_c               # (1, T)
    var = jnp.maximum(ex2 - mean * mean, 0.0)                         # guard cancellation
    inv = jax.lax.rsqrt(var + EPS)                                    # (1, T), EUP
    g = g_ref[...].astype(jnp.float32)                                # (C, 1) lane-broadcast
    b = b_ref[...].astype(jnp.float32)
    # Output pass: recompute (s - mean) instead of materializing a second C x T temp.
    o_ref[0] = ((s - mean) * inv * g + b).astype(o_ref.dtype)


def _chip_vmem_budget():
    """Per-generation (tile_budget_bytes, vmem_limit_bytes).

    v7x has only 64 MiB VMEM per TensorCore -> keep the tile budget small.
    v5e/v6e have 128 MiB physical -> allow bigger tiles for large-C shapes.
    Falls back to the conservative (v7x-safe) numbers if the query fails.
    """
    vmem = 64 * 1024 * 1024
    try:
        info = pltpu.get_tpu_info()
        vmem = int(getattr(info, "vmem_capacity_bytes", vmem))
    except Exception:
        pass
    if vmem <= 64 * 1024 * 1024:                      # v7x-class
        return 10 * 1024 * 1024, 48 * 1024 * 1024
    return 20 * 1024 * 1024, 64 * 1024 * 1024         # v5e / v6e


def _pick_hw_tile(C, hw, itemsize, budget_bytes, steps_target_hw, max_tile=16384):
    """Lane-tile (multiple of 128) sized for VMEM *including* f32 intermediates,
    capped so the grid keeps enough steps for pipeline overlap / 2-TC balance."""
    # Sublane packing: f32 pads C to a multiple of 8; narrower dtypes pack 2x/4x.
    sublane = 8 * max(4 // max(itemsize, 1), 1)
    c_pad = -(-C // sublane) * sublane
    # 2 inputs + 1 output double-buffered, plus ~2 (C x t) f32 in-kernel temps.
    per_lane = 6 * c_pad * itemsize + 2 * c_pad * 4
    t = budget_bytes // per_lane
    t = max((t // 128) * 128, 128)
    t = min(t, max_tile)
    # Keep >= steps_target_hw grid steps along HW when the shape allows it.
    if steps_target_hw > 1:
        cap = max((pl.cdiv(hw, steps_target_hw) // 128) * 128, 128)
        t = min(t, cap)
    if hw <= t:
        return hw                      # full extent is always a legal block dim
    return t                           # multiple of 128; partial tail handled by cdiv grid


def add_and_norm(x_nchw, residual_nchw, gamma, beta, *, hw_tile=None):
    B, C, H, W = x_nchw.shape
    HW = H * W

    # Free reshapes: NCHW is already contiguous as (B, C, H*W) -> no HBM transpose passes.
    x3 = x_nchw.reshape(B, C, HW)
    r3 = residual_nchw.reshape(B, C, HW)
    g2 = gamma.reshape(C, 1)
    b2 = beta.reshape(C, 1)

    itemsize = jnp.dtype(x_nchw.dtype).itemsize
    budget_bytes, vmem_limit = _chip_vmem_budget()
    # Aim for >= ~8 total grid steps (>= 4 per TensorCore on v7x) when possible.
    steps_target_hw = max(1, -(-8 // B))
    t = hw_tile if hw_tile is not None else _pick_hw_tile(
        C, HW, itemsize, budget_bytes, steps_target_hw)
    grid = (B, pl.cdiv(HW, t))         # both axes independent -> megacore-shardable

    cost = pl.CostEstimate(
        flops=10 * B * C * HW,
        transcendentals=B * HW,
        bytes_accessed=3 * B * C * HW * itemsize + 2 * C * 4,
    )

    out3 = pl.pallas_call(
        add_and_norm_kernel,
        out_shape=jax.ShapeDtypeStruct((B, C, HW), x_nchw.dtype),
        grid_spec=pltpu.PrefetchScalarGridSpec(
            num_scalar_prefetch=0,
            grid=grid,
            in_specs=[
                pl.BlockSpec((1, C, t), lambda b, j: (b, 0, j)),
                pl.BlockSpec((1, C, t), lambda b, j: (b, 0, j)),
                pl.BlockSpec((C, 1), lambda b, j: (0, 0)),   # stays VMEM-resident
                pl.BlockSpec((C, 1), lambda b, j: (0, 0)),
            ],
            out_specs=pl.BlockSpec((1, C, t), lambda b, j: (b, 0, j)),
        ),
        compiler_params=pltpu.CompilerParams(
            dimension_semantics=("parallel", "parallel"),
            vmem_limit_bytes=vmem_limit,
        ),
        cost_estimate=cost,
    )(x3, r3, g2, b2)

    return out3.reshape(B, C, H, W)


if __name__ == "__main__":
    B, C, H, W = 2, 4, 16, 16
    key = jax.random.PRNGKey(0)
    kx, kr = jax.random.split(key)
    x = jax.random.normal(kx, (B, C, H, W), dtype=jnp.float32)
    residual = jax.random.normal(kr, (B, C, H, W), dtype=jnp.float32)

    # LayerNorm params, deterministic init matching nn.LayerNorm defaults.
    gamma = jnp.ones((C,), dtype=jnp.float32)
    beta = jnp.zeros((C,), dtype=jnp.float32)

    out = add_and_norm(x, residual, gamma, beta)
    jax.block_until_ready(out)

    # lightweight sanity check against a pure-JAX reference (matches the PyTorch module)
    s = x + residual
    s_nhwc = jnp.transpose(s, (0, 2, 3, 1))
    mean = jnp.mean(s_nhwc, axis=-1, keepdims=True)
    var = jnp.mean((s_nhwc - mean) ** 2, axis=-1, keepdims=True)
    ref = (s_nhwc - mean) * jax.lax.rsqrt(var + EPS) * gamma + beta
    ref = jnp.transpose(ref, (0, 3, 1, 2))
    assert out.shape == (B, C, H, W)
    assert jnp.max(jnp.abs(out - ref)) < 2e-5

    print("KERNEL_OK")
</pallas_src>

<mosaic_0001>
module attributes {stable_mosaic.version = 11 : i64} {
  func.func @add_and_norm_kernel(%arg0: i32, %arg1: i32, %arg2: memref<1x4x128xf32, #tpu.memory_space<vmem>>, %arg3: memref<1x4x128xf32, #tpu.memory_space<vmem>>, %arg4: memref<4x1xf32, #tpu.memory_space<vmem>>, %arg5: memref<4x1xf32, #tpu.memory_space<vmem>>, %arg6: memref<1x4x128xf32, #tpu.memory_space<vmem>>) attributes {dimension_semantics = [#tpu.dimension_semantics<parallel>, #tpu.dimension_semantics<parallel>], iteration_bounds = array<i64: 2, 2>, scalar_prefetch = 0 : i64, scratch_operands = 0 : i64, tpu.core_type = #tpu.core_type<tc>, window_params = [{transform_indices = @transform_0, window_bounds = array<i64: 1, 4, 128>}, {transform_indices = @transform_1, window_bounds = array<i64: 1, 4, 128>}, {pipeline_mode = #tpu.pipeline_mode<synchronous>, transform_indices = @transform_2, window_bounds = array<i64: 4, 1>}, {pipeline_mode = #tpu.pipeline_mode<synchronous>, transform_indices = @transform_3, window_bounds = array<i64: 4, 1>}, {transform_indices = @transform_4, window_bounds = array<i64: 1, 4, 128>}]} {
    %c0 = arith.constant 0 : index
    %c0_0 = arith.constant 0 : index
    %c0_1 = arith.constant 0 : index
    %0 = vector.load %arg2[%c0, %c0_0, %c0_1] : memref<1x4x128xf32, #tpu.memory_space<vmem>>, vector<1x4x128xf32>
    %1 = vector.shape_cast %0 : vector<1x4x128xf32> to vector<4x128xf32>
    %c0_2 = arith.constant 0 : index
    %c0_3 = arith.constant 0 : index
    %c0_4 = arith.constant 0 : index
    %2 = vector.load %arg3[%c0_2, %c0_3, %c0_4] : memref<1x4x128xf32, #tpu.memory_space<vmem>>, vector<1x4x128xf32>
    %3 = vector.shape_cast %2 : vector<1x4x128xf32> to vector<4x128xf32>
    %4 = arith.addf %1, %3 : vector<4x128xf32>
    %cst = arith.constant dense<0.000000e+00> : vector<128xf32>
    %5 = vector.multi_reduction <add>, %4, %cst [0] : vector<4x128xf32> to vector<128xf32>
    %6 = vector.shape_cast %5 : vector<128xf32> to vector<1x128xf32>
    %cst_5 = arith.constant 2.500000e-01 : f32
    %7 = vector.broadcast %cst_5 : f32 to vector<1x128xf32>
    %8 = arith.mulf %6, %7 : vector<1x128xf32>
    %9 = arith.mulf %4, %4 : vector<4x128xf32>
    %cst_6 = arith.constant dense<0.000000e+00> : vector<128xf32>
    %10 = vector.multi_reduction <add>, %9, %cst_6 [0] : vector<4x128xf32> to vector<128xf32>
    %11 = vector.shape_cast %10 : vector<128xf32> to vector<1x128xf32>
    %cst_7 = arith.constant 2.500000e-01 : f32
    %12 = vector.broadcast %cst_7 : f32 to vector<1x128xf32>
    %13 = arith.mulf %11, %12 : vector<1x128xf32>
    %14 = arith.mulf %8, %8 : vector<1x128xf32>
    %15 = arith.subf %13, %14 : vector<1x128xf32>
    %cst_8 = arith.constant 0.000000e+00 : f32
    %16 = vector.broadcast %cst_8 : f32 to vector<1x128xf32>
    %17 = arith.maximumf %15, %16 : vector<1x128xf32>
    %cst_9 = arith.constant 9.99999974E-6 : f32
    %18 = vector.broadcast %cst_9 : f32 to vector<1x128xf32>
    %19 = arith.addf %17, %18 : vector<1x128xf32>
    %20 = math.rsqrt %19 : vector<1x128xf32>
    %c0_10 = arith.constant 0 : index
    %c0_11 = arith.constant 0 : index
    %21 = vector.load %arg4[%c0_10, %c0_11] : memref<4x1xf32, #tpu.memory_space<vmem>>, vector<4x1xf32>
    %c0_12 = arith.constant 0 : index
    %c0_13 = arith.constant 0 : index
    %22 = vector.load %arg5[%c0_12, %c0_13] : memref<4x1xf32, #tpu.memory_space<vmem>>, vector<4x1xf32>
    %23 = vector.broadcast %8 : vector<1x128xf32> to vector<4x128xf32>
    %24 = arith.subf %4, %23 : vector<4x128xf32>
    %25 = vector.broadcast %20 : vector<1x128xf32> to vector<4x128xf32>
    %26 = arith.mulf %24, %25 : vector<4x128xf32>
    %27 = vector.broadcast %21 : vector<4x1xf32> to vector<4x128xf32>
    %28 = arith.mulf %26, %27 : vector<4x128xf32>
    %29 = vector.broadcast %22 : vector<4x1xf32> to vector<4x128xf32>
    %30 = arith.addf %28, %29 : vector<4x128xf32>
    %c0_14 = arith.constant 0 : index
    %c0_15 = arith.constant 0 : index
    %c0_16 = arith.constant 0 : index
    %31 = vector.load %arg6[%c0_14, %c0_15, %c0_16] : memref<1x4x128xf32, #tpu.memory_space<vmem>>, vector<1x4x128xf32>
    %32 = vector.shape_cast %31 : vector<1x4x128xf32> to vector<4x128xf32>
    %33 = vector.shape_cast %30 : vector<4x128xf32> to vector<1x4x128xf32>
    tpu.vector_store %arg6[%c0_14, %c0_15, %c0_16], %33 {strides = array<i32>} : memref<1x4x128xf32, #tpu.memory_space<vmem>>, vector<1x4x128xf32>,
    return
  }
  func.func @transform_0(%arg0: i32, %arg1: i32) -> (i32, i32, i32) {
    %c0_i32 = arith.constant 0 : i32
    %c0_i32_0 = arith.constant 0 : i32
    return %arg0, %c0_i32, %arg1 : i32, i32, i32
  }
  func.func @transform_1(%arg0: i32, %arg1: i32) -> (i32, i32, i32) {
    %c0_i32 = arith.constant 0 : i32
    %c0_i32_0 = arith.constant 0 : i32
    return %arg0, %c0_i32, %arg1 : i32, i32, i32
  }
  func.func @transform_2(%arg0: i32, %arg1: i32) -> (i32, i32) {
    %c0_i32 = arith.constant 0 : i32
    %c0_i32_0 = arith.constant 0 : i32
    %c0_i32_1 = arith.constant 0 : i32
    return %c0_i32, %c0_i32_0 : i32, i32
  }
  func.func @transform_3(%arg0: i32, %arg1: i32) -> (i32, i32) {
    %c0_i32 = arith.constant 0 : i32
    %c0_i32_0 = arith.constant 0 : i32
    %c0_i32_1 = arith.constant 0 : i32
    return %c0_i32, %c0_i32_0 : i32, i32
  }
  func.func @transform_4(%arg0: i32, %arg1: i32) -> (i32, i32, i32) {
    %c0_i32 = arith.constant 0 : i32
    %c0_i32_0 = arith.constant 0 : i32
    return %arg0, %c0_i32, %arg1 : i32, i32, i32
  }
}

</mosaic_0001>

<bundles_post_ra>
// kernel: tpu_custom_call.1
= control target key start
LH: loop header
LB: loop body
LE: loop exit
PB: predicated region body
PF: predicated region fallthrough
CT: control target
= control target key end

     0   :  { %s996_s0 = inlined_call_operand.hbm [shape: f32[2,4,256], index: 0, kind: input, shape index: {}]   ;;  %s997_s1 = inlined_call_operand.hbm [shape: f32[2,4,256], index: 1, kind: input, shape index: {}]   ;;  %s998_s2 = inlined_call_operand.vmem [shape: f32[4,1], index: 2, kind: input, shape index: {}]   ;;  %s999_s3 = inlined_call_operand.vmem [shape: f32[4,1], index: 3, kind: input, shape index: {}]   ;;  %s1000_s4 = inlined_call_operand.hbm [shape: f32[2,4,256], index: 4, kind: output, shape index: {}]  }
   0x1   :  { %1006 = sst [smem:[#allocation12_spill]] %s996_s0 }
   0x2   :  { %9 = vsyncpa [#allocation3], 0 }
   0x3   :  { %11 = vsyncpa [#allocation3 + $0x1], 0 }
   0x4   :  { %12 = vsyncpa [#allocation6], 0 }
   0x5   :  { %14 = vsyncpa [#allocation6 + $0x1], 0 }
   0x6   :  { %15 = vsyncpa [#allocation4], 0 }
   0x7   :  { %17 = vsyncpa [#allocation4 + $0x1], 0  ;;  %s740_s15 = smov 0   ;;  %s742_s16 = smov 0  }
   0x8   :  { %s744_s17 = smov 0   ;;  %s746_s18 = smov 0  }
   0x9   :  { %s748_s19 = smov 0   ;;  %s750_s20 = smov 0  }
   0xa   :  { %s752_s21 = smov 0   ;;  %s754_s22 = smov 0  }
   0xb LB: > { %s441_s23 = sadd.s32 4294967295, %s709_s22   ;;  %s442_s24 = sadd.s32 4294967294, %s709_s22   ;;  %s709_s22 = sphi %s754_s22, %s23_s22   ;;  %s705_s21 = sphi %s752_s21, %s1030_s21   ;;  %s701_s20 = sphi %s750_s20, %s1029_s20   ;;  %s697_s19 = sphi %s748_s19, %s1028_s19   ;;  %s693_s18 = sphi %s746_s18, %s1027_s18   ;;  %s689_s17 = sphi %s744_s17, %s1026_s17   ;;  %s685_s16 = sphi %s742_s16, %s1025_s16   ;;  %s681_s15 = sphi %s740_s15, %s1024_s15  }
   0xc   : > { %s32_s25 = sadd.s32 1, %s701_s20  ;;  %s35_s26 = sadd.s32 1, %s705_s21 }
   0xd   : > { %p33_p0 = scmp.ge.s32.totalorder %s32_s25, 2  ;;  %s44_s27 = sadd.s32 1, %s689_s17 }
   0xe   : > { %p51_p1 = scmp.ne.s32.totalorder %s689_s17, %s685_s16  ;;  %p52_p2 = scmp.eq.s32.totalorder %s709_s22, 0 }
   0xf   : > { %s1032_s25 = smov (%p33_p0, %s32_s25), 0  ;;  %s1034_s26 = smov (!%p33_p0, %s35_s26), %s705_s21 }
  0x10   : > { %s40_s28 = ssub.s32 %s701_s20, %s1032_s25  ;;  %p793_p3 = por %p52_p2, %p51_p1 }
  0x11   : > { %p37_p4 = scmp.ge.s32.totalorder %s1034_s26, 2  ;;  %p57_p5 = scmp.ne.s32.totalorder %s685_s16, %s681_s15 }
  0x12   : > { %p58_p6 = scmp.eq.s32.totalorder %s441_s23, 0  ;;  %p153_p7 = scmp.eq.s32.totalorder %s441_s23, 3 }
  0x13   : > { %s1036_s26 = smov (%p37_p4, %s1034_s26), 0  ;;  %p159_p10 = scmp.eq.s32.totalorder %s442_s24, 3 }
  0x14   : > { %1008 = sst [smem:[#allocation11_spill]] %s1036_s26  ;;  %p801_p8 = por %p58_p6, %p57_p5 }
  0x15   : > { %p805_p9 = por %p153_p7, %p51_p1  ;;  %s39_s6 = ssub.s32 %s705_s21, %s1036_s26 }
  0x16   : > { %s1009_s30 = scalar_select %p801_p8, 1, 0 }
  0x17   : > { %s1010_s5 = scalar_select %p805_p9, 1, 0 }
  0x18   : > { %s41_s7 = sor.u32 %s40_s28, %s39_s6  ;;  %p811_p12 = por %p159_p10, %p57_p5 }
  0x19   : > { %p42_p11 = scmp.eq.s32.totalorder %s41_s7, 0  ;;  %p477_p13 = scmp.lt.s32.totalorder %s709_s22, 4 }
  0x1a   : > { %s1011_s8 = scalar_select %p811_p12, 1, 0 }
  0x1b   : > { %s817_s9 = sand.u32 1, %s689_s17   ;;  %s446_s12 = sshll.u32 %s705_s21, 1 }
  0x1c   : > { %s820_s10 = scalar_select %p42_p11, %s689_s17, %s44_s27  }
  0x1d   : > { %s1001_s11 = sshll.u32 %s817_s9, 2  ;;  %s825_s13 = sadd.s32 %s701_s20, %s446_s12 }
  0x1e   : > { %s189_s14 = scalar_lea.vmem [#allocation2], %s1001_s11  ;;  %s1002_s24 = sshll.u32 %s825_s13, 6 }
  0x1f   : > { %s198_s23 = sshll.u32 %s189_s14, 4  ;;  %s1012_s0 = sld [smem:[#allocation12_spill]]  ;;  %s830_s23 = int_to_ptr.vmem [resolvable:$true] %s198_s23 }
  0x20   : > { %p841_p0 = pnand %p477_p13, %p793_p3  ;;  %s186_s12 = scalar_lea.sflag [#allocation3], %s817_s9 }
  0x22   : > { %p549_p5 = pneg %p841_p0 }
  0x25   : > { %s837_s7 = scalar_lea.hbm %s1012_s0, %s1002_s24  ;;  %s552_s6 = scalar_lea.hbm %s1012_s0, 256 }
  0x26   : > { %s547_s14 = scalar_lea.hbm %s837_s7, 64  ;;  %p553_p3 = scmp.lt.u32.totalorder %s837_s7, %s1012_s0 }
  0x27   : > { %p548_p4 = scmp.ne.s32.totalorder %s837_s7, %s547_s14  ;;  %p554_p10 = scmp.lt.u32.totalorder %s552_s6, %s547_s14 }
  0x28   : > { %p556_p13 = scmp.lt.u32.totalorder %s547_s14, %s837_s7 }
  0x29   : > { %p550_p6 = pnand %p549_p5, %p548_p4  ;;  %p555_p11 = por %p554_p10, %p553_p3 }
  0x2b   : > { %p551_p7 = pneg %p550_p6  ;;  %p557_p1 = por %p556_p13, %p555_p11 }
  0x2d   : > { %p558_p2 = pnand %p557_p1, %p551_p7 }
  0x2f   : > { %561 = shalt.err (!%p558_p2)
}
  0x30   : > { %s562_s26 = scalar_lea.vmem %s830_s23, 64  ;;  %s711_s29 = smov [#allocation2]  }
  0x31   : > { %p563_p4 = scmp.ne.s32.totalorder %s830_s23, %s562_s26  ;;  %s567_s28 = sshll.u32 %s711_s29, 4  ;;  %s568_s28 = int_to_ptr.vmem [resolvable:$false] %s567_s28 }
  0x32   : > { %s569_s11 = scalar_lea.vmem %s568_s28, 128  ;;  %p570_p9 = scmp.lt.s32.totalorder %s830_s23, %s568_s28 }
  0x33   : > { %p565_p6 = pnand %p563_p4, %p549_p5  ;;  %p571_p3 = scmp.lt.s32.totalorder %s569_s11, %s562_s26 }
  0x35   : > { %p566_p12 = pneg %p565_p6  ;;  %p572_p10 = por %p571_p3, %p570_p9 }
  0x37   : > { %p573_p11 = pnand %p572_p10, %p566_p12 }
  0x39   : > { %576 = shalt.err (!%p573_p11)
}
  0x3a   : > { %469 = dma.hbm_to_vmem [thread:$0]  (!%p841_p0), %s837_s7, 64, %s830_s23, %s186_s12  }
  0x3b   : > { %p1014_p1 = scmp.lt.s32.totalorder %s709_s22, 5  ;;  %p1015_p2 = scmp.ge.s32.totalorder %s709_s22, 1 }
  0x3c   : > { %s1017_s26 = sshll.u32 %s825_s13, 6  ;;  %s1018_s28 = sshll.u32 %s817_s9, 2 }
  0x3d   : > { %p877_p7 = pnand %p1015_p2, %p1014_p1  ;;  %s886_s29 = scalar_lea.hbm %s997_s1, %s1017_s26 }
  0x3e   : > { %s209_s11 = scalar_lea.vmem [#allocation5], %s1018_s28  ;;  %s206_s23 = scalar_lea.sflag [#allocation6], %s817_s9 }
  0x3f   : > { %s1016_s24 = scalar_select %p877_p7, 1, 0 }
  0x40   : > { %s218_s0 = sshll.u32 %s209_s11, 4  ;;  %s577_s7 = scalar_lea.hbm %s886_s29, 64  ;;  %s219_s0 = int_to_ptr.vmem [resolvable:$true] %s218_s0 }
  0x41   : > { %p578_p9 = scmp.ne.s32.totalorder %s886_s29, %s577_s7  ;;  %s582_s26 = scalar_lea.hbm %s997_s1, 256 }
  0x42   : > { %p583_p4 = scmp.lt.u32.totalorder %s886_s29, %s997_s1  ;;  %p584_p6 = scmp.lt.u32.totalorder %s582_s26, %s577_s7 }
  0x43   : > { %p580_p12 = pnand %p578_p9, %p549_p5  ;;  %p586_p10 = scmp.lt.u32.totalorder %s577_s7, %s886_s29 }
  0x44   : > { %p585_p3 = por %p584_p6, %p583_p4 }
  0x45   : > { %p581_p13 = pneg %p580_p12 }
  0x46   : > { %p587_p11 = por %p586_p10, %p585_p3 }
  0x48   : > { %p588_p1 = pnand %p587_p11, %p581_p13 }
  0x4a   : > { %591 = shalt.err (!%p588_p1)
}
  0x4b   : > { %s592_s9 = scalar_lea.vmem %s219_s0, 64  ;;  %s712_s28 = smov [#allocation5]  }
  0x4c   : > { %p593_p2 = scmp.ne.s32.totalorder %s219_s0, %s592_s9  ;;  %s597_s11 = sshll.u32 %s712_s28, 4  ;;  %s598_s11 = int_to_ptr.vmem [resolvable:$false] %s597_s11 }
  0x4d   : > { %s599_s13 = scalar_lea.vmem %s598_s11, 128  ;;  %p600_p8 = scmp.lt.s32.totalorder %s219_s0, %s598_s11 }
  0x4e   : > { %p595_p9 = pnand %p593_p2, %p549_p5  ;;  %p601_p7 = scmp.lt.s32.totalorder %s599_s13, %s592_s9 }
  0x50   : > { %p596_p12 = pneg %p595_p9  ;;  %p602_p4 = por %p601_p7, %p600_p8 }
  0x52   : > { %p603_p6 = pnand %p602_p4, %p596_p12 }
  0x54   : > { %606 = shalt.err (!%p603_p6)
}
  0x55   : > { %472 = dma.hbm_to_vmem [thread:$0]  (!%p841_p0), %s886_s29, 64, %s219_s0, %s206_s23  }
  0x56   : > { %p1019_p13 = scmp.ne.s32.totalorder %s1016_s24, 0 }
  0x57   : > { %s913_s7 = sand.u32 (!%p1019_p13), 1, %s685_s16   ;;  %p1020_p8 = scmp.ne.s32.totalorder (!%p1019_p13), %s1009_s30, 0 }
  0x58   : > { %227 = sbr.rel (%p1019_p13) target bundleno = 248 (0xf8), region = 36  ;;  %s916_s12 = sshll.u32 (!%p1019_p13), %s913_s7, 2 }
  0x59   : > { %s230_s26 = scalar_lea.sflag (!%p1019_p13), [#allocation3], %s913_s7  ;;  %s233_s14 = scalar_lea.vmem (!%p1019_p13), [#allocation2], %s916_s12 }
  0x5f   : > { %668 = dma.done.wait (%p1020_p8), %s230_s26, 64  }
  0x60   : > { %670 = vsyncadd (%p1020_p8), %s230_s26, 4294967232  ;;  %s239_s0 = scalar_lea.sflag [#allocation6], %s913_s7  ;;  %s242_s27 = scalar_lea.vmem [#allocation5], %s916_s12 }
  0x61   : > { %672 = dma.done.wait (%p1020_p8), %s239_s0, 64  }
  0x62   : > { %674 = vsyncadd (%p1020_p8), %s239_s0, 4294967232  ;;  %v713_v0 = vmov 0   ;;  %v298_v1 = vld [vmem:[%s998_s2] sm:$0xf]  ;;  %v273_v4 = vld [vmem:[%s242_s27] sm:$0xf] }
  0x63   : > { %544 = vset.pattern.permute.xlu0 %v713_v0  ;;  %v299_v2 = vld [vmem:[%s999_s3] sm:$0xf]  ;;  %vm275_vm0 = vcmask 1043456   ;;  %s456_s30 = sshll.u32 %s697_s19, 1  ;;  %s271_s11 = scalar_lea.vmem [#allocation7], %s916_s12 }
  0x64   : > { %304 = vperm.xlu0 %544, %v298_v1   ;;  %v272_v3 = vld [vmem:[%s233_s14] sm:$0xf]  ;;  %s327_s9 = sadd.s32 %s693_s18, %s456_s30  ;;  %s331_s13 = sshll.u32 %s271_s11, 4  ;;  %s944_s13 = int_to_ptr.vmem [resolvable:$true] %s331_s13 }
  0x65   : > { %v274_v5 = vadd.f32 %v273_v4, %v272_v3  ;;  %s457_s28 = sshll.u32 %s327_s9, 6  ;;  %s316_s19 = scalar_lea.sflag [#allocation4], %s913_s7 }
  0x66   : > { %s942_s0 = scalar_lea.hbm %s1000_s4, %s457_s28  ;;  %s607_s18 = scalar_lea.vmem %s944_s13, 64 }
  0x67   : > { %v276_v6 = vsel %vm275_vm0, %v274_v5, 0.0  ;;  %v284_v7 = vmul.f32 %v274_v5, %v274_v5  ;;  %p608_p0 = scmp.ne.s32.totalorder %s944_s13, %s607_s18  ;;  %p1021_p5 = scmp.ne.s32.totalorder %s1010_s5, 0 }
  0x68   : > { %310 = vperm.xlu0 %544, %v299_v2   ;;  %v277_v8 = vrot.slane %v276_v6, 4  ;;  %s714_s12 = smov [#allocation7]  }
  0x69   : > { %v285_v9 = vsel %vm275_vm0, %v284_v7, 0.0  ;;  %p609_p7 = pnand %p608_p0, %p1021_p5  ;;  %s611_s27 = sshll.u32 %s714_s12, 4  ;;  %s612_s27 = int_to_ptr.vmem [resolvable:$false] %s611_s27 }
  0x6a   : > { %v278_v10 = vadd.f32 %v277_v8, %v276_v6  ;;  %v286_v11 = vrot.slane %v285_v9, 4  ;;  %s613_s24 = scalar_lea.vmem %s612_s27, 128  ;;  %p614_p10 = scmp.lt.s32.totalorder %s944_s13, %s612_s27 }
  0x6b   : > { %p610_p3 = pneg %p609_p7  ;;  %p615_p11 = scmp.lt.s32.totalorder %s613_s24, %s607_s18 }
  0x6c   : > { %v279_v12 = vrot.slane %v278_v10, 2  ;;  %v287_v13 = vadd.f32 %v286_v11, %v285_v9 }
  0x6d   : > { %p616_p1 = por %p615_p11, %p614_p10 }
  0x6e   : > { %v280_v14 = vadd.f32 %v279_v12, %v278_v10  ;;  %v288_v15 = vrot.slane %v287_v13, 2 }
  0x6f   : > { %p617_p2 = pnand %p616_p1, %p610_p3 }
  0x70   : > { %v281_v16 = vrot.slane %v280_v14, 1  ;;  %v289_v17 = vadd.f32 %v288_v15, %v287_v13 }
  0x72   : > { %v282_v18 = vadd.f32 %v281_v16, %v280_v14  ;;  %v290_v19 = vrot.slane %v289_v17, 1 }
  0x74   : > { %v283_v20 = vmul.f32 0.25, %v282_v18  ;;  %v291_v21 = vadd.f32 %v290_v19, %v289_v17 }
  0x76   : > { %v292_v22 = vmul.f32 0.25, %v291_v21  ;;  %v293_v23 = vmul.f32 %v283_v20, %v283_v20  ;;  %v300_v27 = vsub.f32 %v274_v5, %v283_v20 }
  0x78   : > { %v294_v24 = vsub.f32 %v292_v22, %v293_v23 }
  0x7a   : > { %v295_v25 = vmax.f32 %v294_v24, 0.0 }
  0x7c   : > { %v296_v26 = vadd.f32 1e-05, %v295_v25 }
  0x7e   : > { %545 = vrsqrt.f32 %v296_v26 }
  0x88   : > { %v546_v28 = vpop.eup %545 }
  0x89   : > { %v301_v29 = vmul.f32 %v546_v28, %v300_v27 }
  0xe3   : > { %v305_v30 = vpop.permute.xlu0 %304 }
  0xe4   : > { %v307_v31 = vmul.f32 %v305_v30, %v301_v29 }
  0xe7   : > { %v311_v32 = vpop.permute.xlu0 %310 }
  0xe8   : > { %v313_v33 = vadd.f32 %v311_v32, %v307_v31 }
  0xea   : > { %314 = vst [vmem:[%s271_s11] sm:$0xf] %v313_v33 }
  0xeb   : > { %620 = shalt.err (!%p617_p2)
}
  0xec   : > { %s621_s7 = scalar_lea.hbm %s942_s0, 64  ;;  %s625_s6 = scalar_lea.hbm %s1000_s4, 256 }
  0xed   : > { %p622_p9 = scmp.ne.s32.totalorder %s942_s0, %s621_s7  ;;  %p626_p6 = scmp.lt.u32.totalorder %s942_s0, %s1000_s4 }
  0xee   : > { %p627_p13 = scmp.lt.u32.totalorder %s625_s6, %s621_s7  ;;  %p629_p0 = scmp.lt.u32.totalorder %s621_s7, %s942_s0 }
  0xef   : > { %p623_p12 = pnand %p622_p9, %p1021_p5 }
  0xf0   : > { %p628_p8 = por %p627_p13, %p626_p6 }
  0xf1   : > { %p624_p4 = pneg %p623_p12 }
  0xf2   : > { %p630_p7 = por %p629_p0, %p628_p8 }
  0xf4   : > { %p631_p3 = pnand %p630_p7, %p624_p4 }
  0xf6   : > { %634 = shalt.err (!%p631_p3)
}
  0xf7   : > { %464 = dma.vmem_to_hbm [thread:$0]  (%p1021_p5), %s944_s13, 64, %s942_s0, %s316_s19  }
  0xf8 PF: > { %p478_p10 = scmp.ge.s32.totalorder %s709_s22, 2  ;;  %s343_s28 = sand.u32 1, %s681_s15  }
  0xf9   : > { %p1022_p11 = scmp.ne.s32.totalorder %s1011_s8, 0  ;;  %s344_s11 = scalar_lea.sflag [#allocation4], %s343_s28 }
  0xfb   : > { %p474_p1 = pnand %p478_p10, %p1022_p11 }
  0xfd   : > { %676 = dma.done.wait (!%p474_p1), %s344_s11, 64  }
  0xfe   : > { %678 = vsyncadd (!%p474_p1), %s344_s11, 4294967232  ;;  %s23_s22 = sadd.s32 1, %s709_s22   ;;  %s1023_s5 = sld [smem:[#allocation11_spill]] }
  0xff   : > { %p20_p2 = scmp.ge.s32.totalorder %s23_s22, 6   ;;  %s1024_s15 = smov %s685_s16 }
 0x100   : > { %s1025_s16 = smov %s689_s17  ;;  %s1026_s17 = smov %s820_s10 }
 0x101   : > { %s1027_s18 = smov %s701_s20  ;;  %s1028_s19 = smov %s705_s21 }
 0x102   : > { %s1029_s20 = smov %s1032_s25  ;;  %22 = sbr.rel (!%p20_p2) target bundleno = 11 (0xb), region = 94 }
 0x104   : > { %s1030_s21 = smov %s1023_s5 }
 0x109   :  { %349 = vsyncpa [#allocation3], 1 }
 0x10a   :  { %351 = vsyncpa [#allocation3 + $0x1], 1 }
 0x10b   :  { %352 = vsyncpa [#allocation6], 1 }
 0x10c   :  { %354 = vsyncpa [#allocation6 + $0x1], 1 }
 0x10d   :  { %355 = vsyncpa [#allocation4], 1 }
 0x10e   :  { %357 = vsyncpa [#allocation4 + $0x1], 1 }

</bundles_post_ra>
